<compile_context>
chip_gen: v5e
topology: v5e:2x2
jax: 0.10.0
libtpu: 0.0.40
codegen_flags: <defaults>
</compile_context>

<pallas_src>
import functools

import jax
import jax.numpy as jnp
from jax.experimental import pallas as pl
from jax.experimental.pallas import tpu as pltpu


# ----------------------------------------------------------------------------- kernel
def _fused_affine_kernel(x_ref, w_ref, b_ref, o_ref):
    # Single MXU matmul with f32 accumulation + one VPU bias add, all in VMEM.
    acc = jnp.dot(x_ref[...], w_ref[...], preferred_element_type=jnp.float32)
    o_ref[...] = (acc + b_ref[...]).astype(o_ref.dtype)


# --------------------------------------------------------------------------- wrappers
def fuse_params(params):
    """Collapse the activation-free 4-layer chain into one affine map.
    Exact up to f32 rounding; done once at parameter-load time."""
    W_eff = params["W1"] @ params["W2"] @ params["W3"] @ params["W4"]
    b_eff = (
        ((params["b1"] @ params["W2"] + params["b2"]) @ params["W3"] + params["b3"])
        @ params["W4"]
        + params["b4"]
    )
    return W_eff, b_eff


def _choose_batch_tile(B, in_dim, dtype_bytes=4, vmem_budget=24 * 1024 * 1024):
    """Pick a batch tile: big enough to pipeline well (per-step overhead ~0.35us),
    small enough for v7x's scoped VMEM. Tiles >= 8 rows keep (8,128) sublane rules."""
    if B <= 1024:
        return B  # small problems: one block covers the full batch
    tb = 2048
    while tb > 8:
        # double-buffered x tile + double-buffered out tile + resident fused weight/bias
        per_step = (2 * 2 * tb * in_dim + in_dim * in_dim + in_dim) * dtype_bytes
        if per_step <= vmem_budget:
            break
        tb //= 2
    return max(tb, 8)


def ae_simplenet_forward_fused(x, W_eff, b_eff):
    """x: [B, in_dim]; W_eff: [in_dim, in_dim]; b_eff: [1, in_dim]."""
    B, in_dim = x.shape
    tb = _choose_batch_tile(B, in_dim, dtype_bytes=x.dtype.itemsize)
    grid = (pl.cdiv(B, tb),)

    in_specs = [
        pl.BlockSpec((tb, in_dim), lambda i: (i, 0)),      # x: tiled along batch
        pl.BlockSpec((in_dim, in_dim), lambda i: (0, 0)),  # W_eff: VMEM-resident
        pl.BlockSpec((1, in_dim), lambda i: (0, 0)),       # b_eff: VMEM-resident
    ]
    out_specs = pl.BlockSpec((tb, in_dim), lambda i: (i, 0))

    itemsize = x.dtype.itemsize
    cost = pl.CostEstimate(
        flops=2 * B * in_dim * in_dim,
        transcendentals=0,
        bytes_accessed=(B * in_dim * 2 + in_dim * in_dim + in_dim) * itemsize,
    )

    return pl.pallas_call(
        _fused_affine_kernel,
        out_shape=jax.ShapeDtypeStruct((B, in_dim), x.dtype),
        grid=grid,
        in_specs=in_specs,
        out_specs=out_specs,
        compiler_params=pltpu.CompilerParams(
            # use both TCs on v7x; harmless single-TC loop on v5e/v6e
            dimension_semantics=("parallel",),
        ),
        cost_estimate=cost,
    )(x, W_eff, b_eff)


@jax.jit
def ae_simplenet_forward(x, params):
    """Full forward: fuse the 4 affine layers, then run the single-matmul kernel.
    Under one jit so the tiny fusion GEMMs are scheduled with the custom call."""
    W_eff, b_eff = fuse_params(params)
    return ae_simplenet_forward_fused(x, W_eff, b_eff)


# -------------------------------------------------------------------- params/reference
def init_params(key, in_dim, n_hidden_1, n_hidden_2, dtype=jnp.float32):
    """Deterministic init mimicking torch.nn.Linear default:
    U(-1/sqrt(fan_in), 1/sqrt(fan_in)) for both weight and bias."""
    dims = [
        (in_dim, n_hidden_1),
        (n_hidden_1, n_hidden_2),
        (n_hidden_2, n_hidden_1),
        (n_hidden_1, in_dim),
    ]
    params = {}
    keys = jax.random.split(key, 2 * len(dims))
    for i, (fan_in, fan_out) in enumerate(dims):
        bound = 1.0 / jnp.sqrt(jnp.asarray(fan_in, jnp.float32))
        w = jax.random.uniform(keys[2 * i], (fan_in, fan_out),
                               minval=-bound, maxval=bound, dtype=dtype)
        b = jax.random.uniform(keys[2 * i + 1], (1, fan_out),
                               minval=-bound, maxval=bound, dtype=dtype)
        params[f"W{i + 1}"] = w
        params[f"b{i + 1}"] = b
    return params


def reference_forward(x, params):
    # The original (unfused) 4-layer chain, exactly as the PyTorch module computes it.
    h = x
    for i in range(1, 5):
        h = h @ params[f"W{i}"] + params[f"b{i}"]
    return h


# -------------------------------------------------------------------------------- main
if __name__ == "__main__":
    key = jax.random.PRNGKey(0)
    k_x, k_x2, k_p = jax.random.split(key, 3)

    # Small shapes consistent with AE_simpleNet(in_dim, n_hidden_1, n_hidden_2)
    B, in_dim, n_hidden_1, n_hidden_2 = 8, 64, 32, 16

    x = jax.random.normal(k_x, (B, in_dim), dtype=jnp.float32)
    params = init_params(k_p, in_dim, n_hidden_1, n_hidden_2)

    # 1) Small-batch path: single grid step, whole batch resident.
    out = jax.block_until_ready(ae_simplenet_forward(x, params))
    ref = reference_forward(x, params)
    assert out.shape == (B, in_dim)
    assert jnp.allclose(out, ref, atol=1e-4, rtol=1e-4), "small-batch mismatch"

    # 2) Larger-batch path: exercises the batch grid + double-buffered pipeline.
    B2 = 2048
    x2 = jax.random.normal(k_x2, (B2, in_dim), dtype=jnp.float32)
    out2 = jax.block_until_ready(ae_simplenet_forward(x2, params))
    ref2 = reference_forward(x2, params)
    assert out2.shape == (B2, in_dim)
    assert jnp.allclose(out2, ref2, atol=1e-4, rtol=1e-4), "tiled-batch mismatch"

    print("KERNEL_OK")
</pallas_src>

<mosaic_0001>
module attributes {stable_mosaic.version = 11 : i64} {
  func.func @_fused_affine_kernel(%arg0: i32, %arg1: memref<8x64xf32, #tpu.memory_space<vmem>>, %arg2: memref<64x64xf32, #tpu.memory_space<vmem>>, %arg3: memref<1x64xf32, #tpu.memory_space<vmem>>, %arg4: memref<8x64xf32, #tpu.memory_space<vmem>>) attributes {dimension_semantics = [#tpu.dimension_semantics<parallel>], iteration_bounds = array<i64: 1>, scalar_prefetch = 0 : i64, scratch_operands = 0 : i64, tpu.core_type = #tpu.core_type<tc>, window_params = [{transform_indices = @transform_0, window_bounds = array<i64: 8, 64>}, {pipeline_mode = #tpu.pipeline_mode<synchronous>, transform_indices = @transform_1, window_bounds = array<i64: 64, 64>}, {pipeline_mode = #tpu.pipeline_mode<synchronous>, transform_indices = @transform_2, window_bounds = array<i64: 1, 64>}, {transform_indices = @transform_3, window_bounds = array<i64: 8, 64>}]} {
    %c0 = arith.constant 0 : index
    %c0_0 = arith.constant 0 : index
    %0 = vector.load %arg1[%c0, %c0_0] : memref<8x64xf32, #tpu.memory_space<vmem>>, vector<8x64xf32>
    %c0_1 = arith.constant 0 : index
    %c0_2 = arith.constant 0 : index
    %1 = vector.load %arg2[%c0_1, %c0_2] : memref<64x64xf32, #tpu.memory_space<vmem>>, vector<64x64xf32>
    %cst = arith.constant dense<0.000000e+00> : vector<8x64xf32>
    %2 = tpu.matmul %0, %1, %cst {dimension_numbers = #tpu.dot_dimension_numbers<[1], [0], [0], [1], [0, 0, 1, 1], [], []>} : vector<8x64xf32>, vector<64x64xf32>, vector<8x64xf32> -> vector<8x64xf32>
    %c0_3 = arith.constant 0 : index
    %c0_4 = arith.constant 0 : index
    %3 = vector.load %arg3[%c0_3, %c0_4] : memref<1x64xf32, #tpu.memory_space<vmem>>, vector<1x64xf32>
    %4 = vector.broadcast %3 : vector<1x64xf32> to vector<8x64xf32>
    %5 = arith.addf %2, %4 : vector<8x64xf32>
    %c0_5 = arith.constant 0 : index
    %c0_6 = arith.constant 0 : index
    %6 = vector.load %arg4[%c0_5, %c0_6] : memref<8x64xf32, #tpu.memory_space<vmem>>, vector<8x64xf32>
    tpu.vector_store %arg4[%c0_5, %c0_6], %5 {strides = array<i32>} : memref<8x64xf32, #tpu.memory_space<vmem>>, vector<8x64xf32>,
    return
  }
  func.func @transform_0(%arg0: i32) -> (i32, i32) {
    %c0_i32 = arith.constant 0 : i32
    %c0_i32_0 = arith.constant 0 : i32
    return %arg0, %c0_i32 : i32, i32
  }
  func.func @transform_1(%arg0: i32) -> (i32, i32) {
    %c0_i32 = arith.constant 0 : i32
    %c0_i32_0 = arith.constant 0 : i32
    %c0_i32_1 = arith.constant 0 : i32
    return %c0_i32, %c0_i32_0 : i32, i32
  }
  func.func @transform_2(%arg0: i32) -> (i32, i32) {
    %c0_i32 = arith.constant 0 : i32
    %c0_i32_0 = arith.constant 0 : i32
    %c0_i32_1 = arith.constant 0 : i32
    return %c0_i32, %c0_i32_0 : i32, i32
  }
  func.func @transform_3(%arg0: i32) -> (i32, i32) {
    %c0_i32 = arith.constant 0 : i32
    %c0_i32_0 = arith.constant 0 : i32
    return %arg0, %c0_i32 : i32, i32
  }
}

</mosaic_0001>

<bundles_post_ra>
// kernel: ae_simplenet_forward.1
= control target key start
LH: loop header
LB: loop body
LE: loop exit
PB: predicated region body
PF: predicated region fallthrough
CT: control target
= control target key end

     0   :  { %s152_s0 = inlined_call_operand.vmem [shape: f32[8,64], index: 0, kind: input, shape index: {}]   ;;  %s153_s1 = inlined_call_operand.vmem [shape: f32[64,64], index: 1, kind: input, shape index: {}]   ;;  %s154_s2 = inlined_call_operand.vmem [shape: f32[1,64], index: 2, kind: input, shape index: {}]   ;;  %s155_s3 = inlined_call_operand.hbm [shape: f32[8,64], index: 3, kind: output, shape index: {}]  }
   0x1   :  { %v23_v0 = vld [vmem:[%s153_s1 + $0x38] sm:$0xff]  ;;  %v22_v1 = vld [vmem:[%s153_s1 + $0x30] sm:$0xff]  ;;  %v21_v2 = vld [vmem:[%s153_s1 + $0x28] sm:$0xff] }
   0x2   :  { %40 = vmatpush.msra.mxu0 %v23_v0 }
   0x4   :  { %41 = vmatpush.msra.mxu0 %v22_v1 }
   0x5   :  { %8 = vsyncpa [#allocation3], 0  ;;  %v20_v3 = vld [vmem:[%s153_s1 + $0x20] sm:$0xff]  ;;  %v19_v4 = vld [vmem:[%s153_s1 + $0x18] sm:$0xff]  ;;  %vm28_vm0 = vcmask 523264   ;;  %s98_s5 = smov [#allocation2]  }
   0x6   :  { %42 = vmatpush.msra.mxu0 %v21_v2  ;;  %v18_v5 = vld [vmem:[%s153_s1 + $0x10] sm:$0xff]  ;;  %v17_v6 = vld [vmem:[%s153_s1 + $0x8] sm:$0xff]  ;;  %v16_v7 = vld [vmem:[%s153_s1] sm:$0xff]  ;;  %s58_s6 = sshll.u32 %s98_s5, 4  ;;  %s60_s9 = sshll.u32 %s155_s3, 4  ;;  %s59_s6 = int_to_ptr.vmem [resolvable:$true] %s58_s6  ;;  %s61_s9 = int_to_ptr.hbm [resolvable:$true] %s60_s9 }
   0x7   :  { %v15_v8 = vld [vmem:[%s152_s0] sm:$0xff] }
   0x8   :  { %43 = vmatpush.msra.mxu0 %v20_v3  ;;  %v71_v9 = vld [vmem:[%s154_s2] ss:$0 sm:$0xff] }
   0xa   :  { %44 = vmatpush.msra.mxu0 %v19_v4 }
   0xc   :  { %45 = vmatpush.msra.mxu0 %v18_v5 }
   0xe   :  { %46 = vmatpush.msra.mxu0 %v17_v6 }
  0x10   :  { %47 = vmatpush.msra.mxu0 %v16_v7 }
  0x11   :  { %69 = vmatmul.msk.f32.vlgmr.msra.gmra.mxu0 %vm28_vm0, %v15_v8 }
  0x8e   :  { %v49_v10 = vpop.f32.mrf.mxu0 }
  0x8f   :  { %v50_v11 = vadd.f32 %v71_v9, %v49_v10 }
  0x91   :  { %52 = vst.msk [vmem:[#allocation2] sm:$0xff] %vm28_vm0, %v50_v11 }
  0x92   :  { %63 = dma.vmem_to_hbm [thread:$0]  %s59_s6, 128, %s61_s9, [#allocation3]  }
  0x93   :  { %96 = dma.done.wait [#allocation3], 128  }
  0x94   :  { %97 = vsyncadd [#allocation3], 4294967168 }
  0x95   :  { %68 = vsyncpa [#allocation3], 1 }

</bundles_post_ra>
